<compile_context>
chip_gen: v5e
topology: v5e:2x2
jax: 0.10.0
libtpu: 0.0.40
codegen_flags: <defaults>
</compile_context>

<pallas_src>
import functools

import jax
import jax.numpy as jnp
from jax.experimental import pallas as pl
from jax.experimental.pallas import tpu as pltpu

GAMMA_NEG = 4
GAMMA_POS = 0
CLIP = 0.05
EPS = 1e-8

# Total bytes allowed for the double-buffered streamed tiles (all arrays x 2
# buffers). 14 MiB stays inside v5e's 16 MiB default scoped VMEM with headroom
# and is comfortable on v6e/v7x (32 MiB scoped).
_VMEM_PIPELINE_BUDGET = 14 * 1024 * 1024
# Per-array tile cap; 2-4 MiB is the right range on v7x (64 MiB physical VMEM).
_MAX_TILE_BYTES_PER_ARRAY = 4 * 1024 * 1024


def _ipow(t, n):
    """t**n for a static positive int n as explicit multiplies (VPU, not EUP)."""
    assert n >= 1
    result = None
    base = t
    while n:
        if n & 1:
            result = base if result is None else result * base
        n >>= 1
        if n:
            base = base * base
    return result


def _asl_pos_tile(x, y):
    """Per-element *positive* asymmetric weight (= -loss). The final negation is
    deferred to the caller so the reduce path pays it once on a scalar.

    Sigmoid is computed via the tanh identity (one EUP op) instead of
    exp + reciprocal.
    """
    x = x.astype(jnp.float32)
    y = y.astype(jnp.float32)
    xs_pos = 0.5 * jnp.tanh(0.5 * x) + 0.5          # sigmoid(x), 1 EUP push
    xs_neg = 1.0 - xs_pos
    if CLIP is not None and CLIP > 0:
        xs_neg = jnp.minimum(xs_neg + CLIP, 1.0)     # add_(clip).clamp_(max=1)
    los_pos = y * jnp.log(jnp.maximum(xs_pos, EPS))  # clamp(min=eps)
    los_neg = (1.0 - y) * jnp.log(jnp.maximum(xs_neg, EPS))
    if GAMMA_NEG > 0 or GAMMA_POS > 0:
        # TODO(synk): disable_torch_grad_focal_loss is a grad-tape toggle with no
        # forward-pass effect; nothing to translate.
        if GAMMA_POS > 0:
            pos = _ipow(xs_pos * y + EPS, GAMMA_POS) * los_pos
        else:
            pos = los_pos
        if GAMMA_NEG > 0:
            neg = _ipow(xs_neg * (1.0 - y) + EPS, GAMMA_NEG) * los_neg
        else:
            neg = los_neg
        return pos + neg
    return los_pos + los_neg


def _asl_reference(x, y):
    """Pure-JAX reference mirroring the PyTorch forward exactly (incl. the final
    negation); used only for validation in __main__."""
    x = x.astype(jnp.float32)
    y = y.astype(jnp.float32)
    xs_pos = jax.nn.sigmoid(x)
    xs_neg = 1.0 - xs_pos
    if CLIP is not None and CLIP > 0:
        xs_neg = jnp.minimum(xs_neg + CLIP, 1.0)
    los_pos = y * jnp.log(jnp.maximum(xs_pos, EPS))
    los_neg = (1.0 - y) * jnp.log(jnp.maximum(xs_neg, EPS))
    if GAMMA_NEG > 0 or GAMMA_POS > 0:
        pos = ((xs_pos * y + EPS) ** GAMMA_POS) * los_pos if GAMMA_POS > 0 else los_pos
        neg = ((xs_neg * (1.0 - y) + EPS) ** GAMMA_NEG) * los_neg if GAMMA_NEG > 0 else los_neg
        asym = pos + neg
    else:
        asym = los_pos + los_neg
    return -asym


def _partial_sum_kernel(x_ref, y_ref, psum_ref, acc_ref):
    """Row-block partial sums. Grid = (row blocks 'parallel', col blocks
    'arbitrary'); acc_ref is a (1, tn) f32 VMEM scratch.

    Per column step: sublane-only reduce (no cross-lane XLU work, no masked
    tiny stores). On the last column step of a row block: one cross-lane reduce
    and a single lane-dense (8,128) store of the row-block total (in lane 0,
    sublane 0; zeros elsewhere)."""
    j = pl.program_id(1)

    @pl.when(j == 0)
    def _init():
        acc_ref[...] = jnp.zeros_like(acc_ref)

    loss = _asl_pos_tile(x_ref[...], y_ref[...])              # (tm, tn) f32
    acc_ref[...] += jnp.sum(loss, axis=0, keepdims=True)      # sublane reduce only

    @pl.when(j == pl.num_programs(1) - 1)
    def _finalize():
        total = jnp.sum(acc_ref[...])                         # once per row block
        sub = jax.lax.broadcasted_iota(jnp.int32, (8, 128), 0)
        lane = jax.lax.broadcasted_iota(jnp.int32, (8, 128), 1)
        psum_ref[...] = jnp.where((sub == 0) & (lane == 0), total, 0.0)


def _elementwise_kernel(x_ref, y_ref, o_ref):
    """Elementwise kernel for reduction='none' (negation folded into the store)."""
    o_ref[...] = (-_asl_pos_tile(x_ref[...], y_ref[...])).astype(o_ref.dtype)


def _divisor_candidates(dim, quantum):
    """All t that are either dim itself or a multiple of `quantum` dividing dim."""
    return sorted({dim} | {t for t in range(quantum, dim, quantum) if dim % t == 0})


def _auto_tiles(M, N, stream_bytes_per_elem, max_itemsize):
    """Pick (tm, tn) dividing (M, N): as large as the VMEM pipeline budget allows
    (dtype-aware), lane-dense full-width columns preferred, and >= 2 row blocks
    whenever possible so the 'parallel' row axis can shard across v7x's 2 TCs."""
    max_elems = min(
        _VMEM_PIPELINE_BUDGET // (2 * stream_bytes_per_elem),  # 2 pipeline buffers/array
        _MAX_TILE_BYTES_PER_ARRAY // max_itemsize)
    max_elems = max(max_elems, 8 * 128)

    n_cands = _divisor_candidates(N, 128)
    fitting = [t for t in n_cands if 8 * t <= max_elems]
    tn = fitting[-1] if fitting else n_cands[0]

    m_cands = _divisor_candidates(M, 8)
    fitting = [t for t in m_cands if t * tn <= max_elems]
    tm = fitting[-1] if fitting else m_cands[0]

    # Keep at least 2 row blocks when possible (megacore sharding on v7x).
    if M // tm < 2:
        two_block = [t for t in m_cands if t * tn <= max_elems and M // t >= 2]
        if two_block:
            tm = two_block[-1]
    return tm, tn


@functools.partial(jax.jit, static_argnames=("reduction", "tm", "tn"))
def asymmetric_loss(x, y, *, reduction="mean", tm=None, tn=None):
    assert x.ndim == 2 and x.shape == y.shape
    M, N = x.shape

    if jnp.issubdtype(x.dtype, jnp.floating):
        none_out_dtype = x.dtype
    else:
        none_out_dtype = jnp.float32

    if reduction in ("mean", "sum"):
        stream_bytes = x.dtype.itemsize + y.dtype.itemsize
        max_item = max(x.dtype.itemsize, y.dtype.itemsize)
    else:
        out_item = jnp.dtype(none_out_dtype).itemsize
        stream_bytes = x.dtype.itemsize + y.dtype.itemsize + out_item
        max_item = max(x.dtype.itemsize, y.dtype.itemsize, out_item)

    auto_tm, auto_tn = _auto_tiles(M, N, stream_bytes, max_item)
    tm = auto_tm if tm is None else tm
    tn = auto_tn if tn is None else tn
    assert M % tm == 0 and N % tn == 0, "tile must divide the array shape"
    grid = (M // tm, N // tn)

    if reduction in ("mean", "sum"):
        partials = pl.pallas_call(
            _partial_sum_kernel,
            out_shape=jax.ShapeDtypeStruct((grid[0] * 8, 128), jnp.float32),
            grid_spec=pltpu.PrefetchScalarGridSpec(
                num_scalar_prefetch=0,
                grid=grid,
                in_specs=[
                    pl.BlockSpec((tm, tn), lambda i, j: (i, j)),
                    pl.BlockSpec((tm, tn), lambda i, j: (i, j)),
                ],
                # (8,128)-conforming per-row-block output tile; revisited only
                # along the trailing 'arbitrary' reduction axis.
                out_specs=pl.BlockSpec((8, 128), lambda i, j: (i, 0)),
                scratch_shapes=[pltpu.VMEM((1, tn), jnp.float32)],
            ),
            compiler_params=pltpu.CompilerParams(
                dimension_semantics=("parallel", "arbitrary")),
        )(x, y)
        total = jnp.sum(partials)   # tiny final reduce in JAX
        loss = -total               # negation deferred out of the per-element body
        if reduction == "mean":
            return loss / jnp.float32(M * N)
        return loss

    # reduction == 'none'
    return pl.pallas_call(
        _elementwise_kernel,
        out_shape=jax.ShapeDtypeStruct((M, N), none_out_dtype),
        grid_spec=pltpu.PrefetchScalarGridSpec(
            num_scalar_prefetch=0,
            grid=grid,
            in_specs=[
                pl.BlockSpec((tm, tn), lambda i, j: (i, j)),
                pl.BlockSpec((tm, tn), lambda i, j: (i, j)),
            ],
            out_specs=pl.BlockSpec((tm, tn), lambda i, j: (i, j)),
        ),
        compiler_params=pltpu.CompilerParams(
            dimension_semantics=("parallel", "parallel")),
    )(x, y)


if __name__ == "__main__":
    key = jax.random.PRNGKey(0)
    kx, ky = jax.random.split(key)

    B, C = 16, 256  # batch, num_labels (multi-label classification logits)
    x = jax.random.normal(kx, (B, C), dtype=jnp.float32)
    y = (jax.random.uniform(ky, (B, C)) < 0.3).astype(jnp.float32)

    ref_elem = _asl_reference(x, y)
    ref_mean = jnp.mean(ref_elem)

    # mean (default) — auto tiles give 2 row blocks x full-width columns.
    out = jax.block_until_ready(asymmetric_loss(x, y, reduction="mean"))
    assert jnp.allclose(out, ref_mean, rtol=1e-5, atol=1e-5), (out, ref_mean)

    # sum
    out_sum = jax.block_until_ready(asymmetric_loss(x, y, reduction="sum"))
    assert jnp.allclose(out_sum, jnp.sum(ref_elem), rtol=1e-5, atol=1e-4)

    # none (f32 in -> f32 out)
    out_none = jax.block_until_ready(asymmetric_loss(x, y, reduction="none"))
    assert out_none.dtype == jnp.float32
    assert jnp.allclose(out_none, ref_elem, rtol=1e-5, atol=1e-5)

    # exercise the multi-block column accumulation path with forced small tiles
    out_tiled = jax.block_until_ready(
        asymmetric_loss(x, y, reduction="mean", tm=8, tn=128))
    assert jnp.allclose(out_tiled, ref_mean, rtol=1e-5, atol=1e-5), (out_tiled, ref_mean)

    # bf16 inputs (half the HBM read bytes); math stays f32 in-kernel
    xb, yb = x.astype(jnp.bfloat16), y.astype(jnp.bfloat16)
    ref_bf16 = jnp.mean(_asl_reference(xb.astype(jnp.float32),
                                       yb.astype(jnp.float32)))
    out_bf16 = jax.block_until_ready(asymmetric_loss(xb, yb, reduction="mean"))
    assert jnp.allclose(out_bf16, ref_bf16, rtol=1e-4, atol=1e-4)

    # bf16 'none' path emits a bf16 output (halved write bytes)
    out_none_bf16 = jax.block_until_ready(
        asymmetric_loss(xb, yb, reduction="none"))
    assert out_none_bf16.dtype == jnp.bfloat16
    ref_none_bf16 = _asl_reference(xb.astype(jnp.float32), yb.astype(jnp.float32))
    assert jnp.allclose(out_none_bf16.astype(jnp.float32), ref_none_bf16,
                        rtol=5e-2, atol=5e-2)

    print("KERNEL_OK")
</pallas_src>

<mosaic_0001>
module attributes {stable_mosaic.version = 11 : i64} {
  func.func @_partial_sum_kernel(%arg0: i32, %arg1: i32, %arg2: memref<8x256xf32, #tpu.memory_space<vmem>>, %arg3: memref<8x256xf32, #tpu.memory_space<vmem>>, %arg4: memref<8x128xf32, #tpu.memory_space<vmem>>, %arg5: memref<1x256xf32, #tpu.memory_space<vmem>>) attributes {dimension_semantics = [#tpu.dimension_semantics<parallel>, #tpu.dimension_semantics<arbitrary>], iteration_bounds = array<i64: 2, 1>, scalar_prefetch = 0 : i64, scratch_operands = 1 : i64, tpu.core_type = #tpu.core_type<tc>, window_params = [{transform_indices = @transform_0, window_bounds = array<i64: 8, 256>}, {transform_indices = @transform_1, window_bounds = array<i64: 8, 256>}, {transform_indices = @transform_2, window_bounds = array<i64: 8, 128>}]} {
    %c0_i32 = arith.constant 0 : i32
    %0 = arith.cmpi eq, %arg1, %c0_i32 : i32
    %1 = arith.extui %0 : i1 to i32
    %c0_i32_0 = arith.constant 0 : i32
    %2 = arith.cmpi ne, %1, %c0_i32_0 : i32
    scf.if %2 {
      %cst_21 = arith.constant 0.000000e+00 : f32
      %45 = vector.broadcast %cst_21 : f32 to vector<1x256xf32>
      %c0_22 = arith.constant 0 : index
      %c0_23 = arith.constant 0 : index
      %46 = vector.load %arg5[%c0_22, %c0_23] : memref<1x256xf32, #tpu.memory_space<vmem>>, vector<1x256xf32>
      tpu.vector_store %arg5[%c0_22, %c0_23], %45 {strides = array<i32>} : memref<1x256xf32, #tpu.memory_space<vmem>>, vector<1x256xf32>,
    } else {
    }
    %c0 = arith.constant 0 : index
    %c0_1 = arith.constant 0 : index
    %3 = vector.load %arg2[%c0, %c0_1] : memref<8x256xf32, #tpu.memory_space<vmem>>, vector<8x256xf32>
    %c0_2 = arith.constant 0 : index
    %c0_3 = arith.constant 0 : index
    %4 = vector.load %arg3[%c0_2, %c0_3] : memref<8x256xf32, #tpu.memory_space<vmem>>, vector<8x256xf32>
    %cst = arith.constant 5.000000e-01 : f32
    %5 = vector.broadcast %cst : f32 to vector<8x256xf32>
    %6 = arith.mulf %5, %3 : vector<8x256xf32>
    %7 = math.tanh %6 : vector<8x256xf32>
    %cst_4 = arith.constant 5.000000e-01 : f32
    %8 = vector.broadcast %cst_4 : f32 to vector<8x256xf32>
    %9 = arith.mulf %8, %7 : vector<8x256xf32>
    %cst_5 = arith.constant 5.000000e-01 : f32
    %10 = vector.broadcast %cst_5 : f32 to vector<8x256xf32>
    %11 = arith.addf %9, %10 : vector<8x256xf32>
    %cst_6 = arith.constant 1.000000e+00 : f32
    %12 = vector.broadcast %cst_6 : f32 to vector<8x256xf32>
    %13 = arith.subf %12, %11 : vector<8x256xf32>
    %cst_7 = arith.constant 5.000000e-02 : f32
    %14 = vector.broadcast %cst_7 : f32 to vector<8x256xf32>
    %15 = arith.addf %13, %14 : vector<8x256xf32>
    %cst_8 = arith.constant 1.000000e+00 : f32
    %16 = vector.broadcast %cst_8 : f32 to vector<8x256xf32>
    %17 = arith.minimumf %15, %16 : vector<8x256xf32>
    %cst_9 = arith.constant 9.99999993E-9 : f32
    %18 = vector.broadcast %cst_9 : f32 to vector<8x256xf32>
    %19 = arith.maximumf %11, %18 : vector<8x256xf32>
    %20 = math.log %19 : vector<8x256xf32>
    %21 = arith.mulf %4, %20 : vector<8x256xf32>
    %cst_10 = arith.constant 1.000000e+00 : f32
    %22 = vector.broadcast %cst_10 : f32 to vector<8x256xf32>
    %23 = arith.subf %22, %4 : vector<8x256xf32>
    %cst_11 = arith.constant 9.99999993E-9 : f32
    %24 = vector.broadcast %cst_11 : f32 to vector<8x256xf32>
    %25 = arith.maximumf %17, %24 : vector<8x256xf32>
    %26 = math.log %25 : vector<8x256xf32>
    %27 = arith.mulf %23, %26 : vector<8x256xf32>
    %cst_12 = arith.constant 1.000000e+00 : f32
    %28 = vector.broadcast %cst_12 : f32 to vector<8x256xf32>
    %29 = arith.subf %28, %4 : vector<8x256xf32>
    %30 = arith.mulf %17, %29 : vector<8x256xf32>
    %cst_13 = arith.constant 9.99999993E-9 : f32
    %31 = vector.broadcast %cst_13 : f32 to vector<8x256xf32>
    %32 = arith.addf %30, %31 : vector<8x256xf32>
    %33 = arith.mulf %32, %32 : vector<8x256xf32>
    %34 = arith.mulf %33, %33 : vector<8x256xf32>
    %35 = arith.mulf %34, %27 : vector<8x256xf32>
    %36 = arith.addf %21, %35 : vector<8x256xf32>
    %c0_14 = arith.constant 0 : index
    %c0_15 = arith.constant 0 : index
    %37 = vector.load %arg5[%c0_14, %c0_15] : memref<1x256xf32, #tpu.memory_space<vmem>>, vector<1x256xf32>
    %cst_16 = arith.constant dense<0.000000e+00> : vector<256xf32>
    %38 = vector.multi_reduction <add>, %36, %cst_16 [0] : vector<8x256xf32> to vector<256xf32>
    %39 = vector.shape_cast %38 : vector<256xf32> to vector<1x256xf32>
    %40 = arith.addf %37, %39 : vector<1x256xf32>
    %c0_17 = arith.constant 0 : index
    %c0_18 = arith.constant 0 : index
    %41 = vector.load %arg5[%c0_17, %c0_18] : memref<1x256xf32, #tpu.memory_space<vmem>>, vector<1x256xf32>
    tpu.vector_store %arg5[%c0_17, %c0_18], %40 {strides = array<i32>} : memref<1x256xf32, #tpu.memory_space<vmem>>, vector<1x256xf32>,
    %c0_i32_19 = arith.constant 0 : i32
    %42 = arith.cmpi eq, %arg1, %c0_i32_19 : i32
    %43 = arith.extui %42 : i1 to i32
    %c0_i32_20 = arith.constant 0 : i32
    %44 = arith.cmpi ne, %43, %c0_i32_20 : i32
    scf.if %44 {
      %c0_21 = arith.constant 0 : index
      %c0_22 = arith.constant 0 : index
      %45 = vector.load %arg5[%c0_21, %c0_22] : memref<1x256xf32, #tpu.memory_space<vmem>>, vector<1x256xf32>
      %46 = vector.shape_cast %45 : vector<1x256xf32> to vector<1x1x256xf32>
      %cst_23 = arith.constant dense<0.000000e+00> : vector<1xf32>
      %47 = vector.multi_reduction <add>, %46, %cst_23 [1, 2] : vector<1x1x256xf32> to vector<1xf32>
      %48 = vector.shape_cast %47 : vector<1xf32> to vector<1x1x1xf32>
      %49 = vector.extract %48[0, 0, 0] : f32 from vector<1x1x1xf32>
      %50 = tpu.iota {dimensions = array<i32: 0>} : vector<8x128xi32>
      %51 = tpu.iota {dimensions = array<i32: 1>} : vector<8x128xi32>
      %c0_i32_24 = arith.constant 0 : i32
      %52 = vector.broadcast %c0_i32_24 : i32 to vector<8x128xi32>
      %53 = arith.cmpi eq, %50, %52 : vector<8x128xi32>
      %c0_i32_25 = arith.constant 0 : i32
      %54 = vector.broadcast %c0_i32_25 : i32 to vector<8x128xi32>
      %55 = arith.cmpi eq, %51, %54 : vector<8x128xi32>
      %56 = arith.andi %53, %55 : vector<8x128xi1>
      %cst_26 = arith.constant 0.000000e+00 : f32
      %57 = vector.broadcast %49 : f32 to vector<8x128xf32>
      %58 = vector.broadcast %cst_26 : f32 to vector<8x128xf32>
      %59 = arith.select %56, %57, %58 : vector<8x128xi1>, vector<8x128xf32>
      %c0_27 = arith.constant 0 : index
      %c0_28 = arith.constant 0 : index
      %60 = vector.load %arg4[%c0_27, %c0_28] : memref<8x128xf32, #tpu.memory_space<vmem>>, vector<8x128xf32>
      tpu.vector_store %arg4[%c0_27, %c0_28], %59 {strides = array<i32>} : memref<8x128xf32, #tpu.memory_space<vmem>>, vector<8x128xf32>,
    } else {
    }
    return
  }
  func.func @transform_0(%arg0: i32, %arg1: i32) -> (i32, i32) {
    %c0_i32 = arith.constant 0 : i32
    return %arg0, %arg1 : i32, i32
  }
  func.func @transform_1(%arg0: i32, %arg1: i32) -> (i32, i32) {
    %c0_i32 = arith.constant 0 : i32
    return %arg0, %arg1 : i32, i32
  }
  func.func @transform_2(%arg0: i32, %arg1: i32) -> (i32, i32) {
    %c0_i32 = arith.constant 0 : i32
    %c0_i32_0 = arith.constant 0 : i32
    return %arg0, %c0_i32 : i32, i32
  }
}

</mosaic_0001>

<bundles_post_ra>
// kernel: asymmetric_loss.1
= control target key start
LH: loop header
LB: loop body
LE: loop exit
PB: predicated region body
PF: predicated region fallthrough
CT: control target
= control target key end

     0   :  { %7 = vsyncpa [#allocation4], 0  ;;  %s770_s0 = inlined_call_operand.hbm [shape: f32[16,256], index: 0, kind: input, shape index: {}]   ;;  %s771_s1 = inlined_call_operand.hbm [shape: f32[16,256], index: 1, kind: input, shape index: {}]   ;;  %s772_s2 = inlined_call_operand.vmem [shape: f32[16,128], index: 2, kind: output, shape index: {}]  }
   0x1   :  { %9 = vsyncpa [#allocation4 + $0x1], 0 }
   0x2   :  { %10 = vsyncpa [#allocation6], 0 }
   0x3   :  { %12 = vsyncpa [#allocation6 + $0x1], 0  ;;  %s664_s9 = smov 0   ;;  %s666_s10 = smov 0  }
   0x4   :  { %s668_s11 = smov 0   ;;  %s670_s12 = smov 0  }
   0x5   :  { %s672_s13 = smov 0   ;;  %s674_s14 = smov 0  }
   0x6 LB: > { %s439_s15 = sadd.s32 4294967295, %s646_s14   ;;  %s30_s16 = sadd.s32 1, %s642_s13  ;;  %s646_s14 = sphi %s674_s14, %s18_s14   ;;  %s642_s13 = sphi %s672_s13, %s781_s13   ;;  %s638_s12 = sphi %s670_s12, %s780_s12   ;;  %s634_s11 = sphi %s668_s11, %s779_s11   ;;  %s630_s10 = sphi %s666_s10, %s778_s10   ;;  %s626_s9 = sphi %s664_s9, %s777_s9  }
   0x7   : > { %p32_p0 = scmp.ge.s32.totalorder %s30_s16, 2  ;;  %s39_s17 = sadd.s32 1, %s634_s11 }
   0x8   : > { %p46_p1 = scmp.ne.s32.totalorder %s634_s11, %s630_s10  ;;  %p47_p2 = scmp.eq.s32.totalorder %s646_s14, 0 }
   0x9   : > { %s783_s16 = smov (%p32_p0, %s30_s16), 0  ;;  %p52_p4 = scmp.ne.s32.totalorder %s630_s10, %s626_s9 }
   0xa   : > { %p700_p3 = por %p47_p2, %p46_p1  ;;  %s34_s19 = ssub.s32 %s642_s13, %s783_s16 }
   0xb   : > { %p53_p5 = scmp.eq.s32.totalorder %s439_s15, 0  ;;  %p37_p6 = scmp.eq.s32.totalorder %s34_s19, 0 }
   0xc   : > { %p470_p8 = scmp.lt.s32.totalorder %s646_s14, 2  ;;  %s130_s22 = sand.u32 1, %s634_s11  }
   0xd   : > { %p707_p7 = por %p53_p5, %p52_p4  ;;  %s455_s23 = sshll.u32 %s642_s13, 4 }
   0xe   : > { %s713_s21 = scalar_select %p37_p6, %s634_s11, %s39_s17  }
   0xf   : > { %s443_s24 = sshll.u32 %s130_s22, 4  ;;  %s141_s27 = scalar_lea.hbm %s770_s0, %s455_s23 }
  0x10   : > { %s143_s28 = sshll.u32 %s141_s27, 4  ;;  %s134_s29 = scalar_lea.vmem [#allocation3], %s443_s24  ;;  %s144_s28 = int_to_ptr.hbm [resolvable:$true] %s143_s28 }
  0x11   : > { %s145_s30 = sshll.u32 %s134_s29, 4  ;;  %p464_p9 = pnand %p470_p8, %p700_p3  ;;  %s146_s30 = int_to_ptr.vmem [resolvable:$true] %s145_s30 }
  0x12   : > { %p449_p10 = scmp.ge.s32.totalorder %s646_s14, 1  ;;  %p172_p11 = scmp.lt.s32.totalorder %s646_s14, 3 }
  0x13   : > { %s131_s3 = scalar_lea.sflag [#allocation4], %s130_s22  ;;  %s163_s6 = scalar_lea.hbm %s771_s1, %s455_s23 }
  0x14   : > { %466 = dma.hbm_to_vmem [thread:$0]  (!%p464_p9), %s144_s28, 256, %s146_s30, %s131_s3  }
  0x15   : > { %p173_p12 = pnand %p449_p10, %p172_p11  ;;  %s165_s7 = sshll.u32 %s163_s6, 4  ;;  %s166_s7 = int_to_ptr.hbm [resolvable:$true] %s165_s7 }
  0x16   : > { %s156_s8 = scalar_lea.vmem [#allocation5], %s443_s24  ;;  %s153_s15 = scalar_lea.sflag [#allocation6], %s130_s22 }
  0x17   : > { %s167_s9 = sshll.u32 %s156_s8, 4  ;;  %176 = sbr.rel (%p173_p12) target bundleno = 280 (0x118), region = 28  ;;  %s168_s9 = int_to_ptr.vmem [resolvable:$true] %s167_s9 }
  0x18   : > { %469 = dma.hbm_to_vmem [thread:$0]  (!%p464_p9), %s166_s7, 256, %s168_s9, %s153_s15  }
  0x19   : > { %s178_s17 = sand.u32 (!%p173_p12), 1, %s630_s10  }
  0x1a   : > { %s450_s18 = sshll.u32 (!%p173_p12), %s178_s17, 4  ;;  %s179_s19 = scalar_lea.sflag (!%p173_p12), [#allocation4], %s178_s17 }
  0x1b   : > { %s182_s25 = scalar_lea.vmem (!%p173_p12), [#allocation3], %s450_s18 }
  0x1c   : > { %617 = dma.done.wait (%p707_p7), %s179_s19, 256  }
  0x1d   : > { %619 = vsyncadd (%p707_p7), %s179_s19, 4294967040  ;;  %s189_s23 = scalar_lea.sflag [#allocation6], %s178_s17  ;;  %s192_s24 = scalar_lea.vmem [#allocation5], %s450_s18 }
  0x1e   : > { %621 = dma.done.wait (%p707_p7), %s189_s23, 256  }
  0x1f   : > { %623 = vsyncadd (%p707_p7), %s189_s23, 4294967040  ;;  %v228_v0 = vlaneseq  ;;  %v648_v2 = vmov 0.0   ;;  %v233_v3 = vld [vmem:[%s182_s25] sm:$0xff]  ;;  %v234_v4 = vld [vmem:[%s182_s25 + $0x8] sm:$0xff]  ;;  %vm297_vm1 = vcmask 1040384   ;;  %p220_p13 = scmp.lt.s32.totalorder %s638_s12, 1 }
  0x20   : > { %v237_v5 = vmul.f32 0.5, %v233_v3  ;;  %v238_v6 = vmul.f32 0.5, %v234_v4  ;;  %v235_v12 = vld [vmem:[%s192_s24] sm:$0xff]  ;;  %v236_v14 = vld [vmem:[%s192_s24 + $0x8] sm:$0xff] }
  0x21   : > { %vm737_vm0 = vcmp.lt.s32.totalorder %v228_v0, 256  ;;  %v259_v20 = vsub.f32 1.0, %v235_v12  ;;  %v260_v22 = vsub.f32 1.0, %v236_v14  ;;  %v328_v1 = vshrl.u32 %v228_v0, 7  ;;  %s785_s12 = smov (!%p220_p13, %s638_s12), 1 }
  0x22   : > { %232 = vst.msk [vmem:[#allocation2] sm:$0x3] %vm737_vm0, %v648_v2  ;;  %520 = vtanh.f32 %v237_v5  ;;  %s452_s20 = sshll.u32 %s785_s12, 3 }
  0x23   : > { %522 = vtanh.f32 %v238_v6  ;;  %vm331_vm2 = vcmp.eq.s32.totalorder %v328_v1, 0  ;;  %s223_s27 = scalar_lea.vmem %s772_s2, %s452_s20 }
  0x28   : > { %v521_v7 = vpop.eup %520 }
  0x29   : > { %v523_v8 = vpop.eup %522  ;;  %v241_v9 = vmul.f32 0.5, %v521_v7  ;;  %v281_v63 = vld [vmem:[#allocation2] sm:$0x3] }
  0x2a   : > { %v242_v10 = vmul.f32 0.5, %v523_v8 }
  0x2b   : > { %v243_v11 = vadd.f32 0.5, %v241_v9 }
  0x2c   : > { %v244_v13 = vadd.f32 0.5, %v242_v10 }
  0x2d   : > { %v245_v15 = vsub.f32 1.0, %v243_v11  ;;  %v251_v16 = vmax.f32 %v243_v11, 1e-08 }
  0x2e   : > { %v246_v17 = vsub.f32 1.0, %v244_v13  ;;  %v252_v18 = vmax.f32 %v244_v13, 1e-08 }
  0x2f   : > { %v247_v19 = vadd.f32 0.05, %v245_v15  ;;  %524 = vlog2.f32 %v251_v16 }
  0x30   : > { %v248_v21 = vadd.f32 0.05, %v246_v17  ;;  %526 = vlog2.f32 %v252_v18  ;;  %v330_v18 = vand.u32 127, %v228_v0 }
  0x31   : > { %v249_v23 = vmin.f32 %v247_v19, 1.0 }
  0x32   : > { %v250_v24 = vmin.f32 %v248_v21, 1.0  ;;  %vm332_vm3 = vcmp.eq.s32.totalorder %v330_v18, 0 }
  0x33   : > { %v261_v25 = vmax.f32 %v249_v23, 1e-08  ;;  %v269_v26 = vmul.f32 %v259_v20, %v249_v23  ;;  %vm333_vm4 = vmand %vm331_vm2, %vm332_vm3 }
  0x34   : > { %v262_v27 = vmax.f32 %v250_v24, 1e-08  ;;  %v270_v28 = vmul.f32 %v260_v22, %v250_v24 }
  0x35   : > { %528 = vlog2.f32 %v261_v25  ;;  %v271_v29 = vadd.f32 1e-08, %v269_v26  ;;  %v525_v31 = vpop.eup %524 }
  0x36   : > { %530 = vlog2.f32 %v262_v27  ;;  %v272_v30 = vadd.f32 1e-08, %v270_v28  ;;  %v527_v32 = vpop.eup %526  ;;  %v254_v35 = vmul.f32 0.6931472, %v525_v31 }
  0x37   : > { %v273_v33 = vmul.f32 %v271_v29, %v271_v29  ;;  %v256_v37 = vmul.f32 0.6931472, %v527_v32 }
  0x38   : > { %v274_v34 = vmul.f32 %v272_v30, %v272_v30  ;;  %v257_v43 = vmul.f32 %v254_v35, %v235_v12 }
  0x39   : > { %v275_v40 = vmul.f32 %v273_v33, %v273_v33  ;;  %v258_v45 = vmul.f32 %v256_v37, %v236_v14 }
  0x3a   : > { %v276_v42 = vmul.f32 %v274_v34, %v274_v34 }
  0x3b   : > { %v529_v36 = vpop.eup %528 }
  0x3c   : > { %v531_v38 = vpop.eup %530  ;;  %v264_v39 = vmul.f32 0.6931472, %v529_v36 }
  0x3d   : > { %v266_v41 = vmul.f32 0.6931472, %v531_v38 }
  0x3e   : > { %v267_v44 = vmul.f32 %v264_v39, %v259_v20 }
  0x3f   : > { %v268_v46 = vmul.f32 %v266_v41, %v260_v22 }
  0x40   : > { %v277_v47 = vmul.f32 %v275_v40, %v267_v44 }
  0x41   : > { %v278_v48 = vmul.f32 %v276_v42, %v268_v46 }
  0x42   : > { %v279_v49 = vadd.f32 %v277_v47, %v257_v43 }
  0x43   : > { %v280_v50 = vadd.f32 %v278_v48, %v258_v45 }
  0x44   : > { %v282_v51 = vrot.slane %v279_v49, 4 }
  0x45   : > { %v288_v52 = vrot.slane %v280_v50, 4 }
  0x46   : > { %v283_v53 = vadd.f32 %v282_v51, %v279_v49 }
  0x47   : > { %v289_v54 = vadd.f32 %v288_v52, %v280_v50 }
  0x48   : > { %v284_v55 = vrot.slane %v283_v53, 2 }
  0x49   : > { %v290_v56 = vrot.slane %v289_v54, 2 }
  0x4a   : > { %v285_v57 = vadd.f32 %v284_v55, %v283_v53 }
  0x4b   : > { %v291_v58 = vadd.f32 %v290_v56, %v289_v54 }
  0x4c   : > { %v286_v59 = vrot.slane %v285_v57, 1 }
  0x4d   : > { %v292_v60 = vrot.slane %v291_v58, 1 }
  0x4e   : > { %v287_v61 = vadd.f32 %v286_v59, %v285_v57 }
  0x4f   : > { %v293_v62 = vadd.f32 %v292_v60, %v291_v58 }
  0x51   : > { %v296_v2 = vrot.slane %v293_v62, 7 }
  0x53   : > { %v298_v3 = vsel %vm297_vm1, %v287_v61, %v296_v2 }
  0x54   : > { %v300_v4 = vadd.f32 %v298_v3, %v281_v63 }
  0x56   : > { %305 = vst.msk [vmem:[#allocation2] sm:$0x3] %vm737_vm0, %v300_v4 }
  0x5d   : > { %v309_v5 = vld [vmem:[#allocation2] sm:$0x3] }
  0x5e   : > { %v311_v6 = vperm.slane %v309_v5, 0  ;;  %v312_v7 = vperm.slane %v309_v5, 1 }
  0x60   : > { %v315_v8 = vsel %vm297_vm1, %v311_v6, 0.0  ;;  %v316_v9 = vsel %vm297_vm1, %v312_v7, 0.0 }
  0x61   : > { %v317_v10 = vadd.f32 %v316_v9, %v315_v8 }
  0x63   : > { %318 = vadd.xlane.f32.xlu0 %v317_v10 }
  0xd6   : > { %v319_v11 = vpop.xlane.xlu0 %318 }
  0xd7   : > { %v320_v12 = vrot.slane %v319_v11, 4 }
  0xd9   : > { %v321_v13 = vadd.f32 %v320_v12, %v319_v11 }
  0xdb   : > { %v322_v14 = vrot.slane %v321_v13, 2 }
  0xdd   : > { %v323_v15 = vadd.f32 %v322_v14, %v321_v13 }
  0xdf   : > { %v324_v16 = vrot.slane %v323_v15, 1 }
  0xe1   : > { %v325_v17 = vadd.f32 %v324_v16, %v323_v15 }
  0xe3   : > { %457 = vpush %v325_v17 }
 0x114   : > { %s458_s28 = spop %457 }
 0x115   : > { %v334_v19 = vstv %s458_s28 }
 0x116   : > { %v335_v20 = vsel %vm333_vm4, %v334_v19, 0.0 }
 0x117   : > { %336 = vst [vmem:[%s223_s27] sm:$0xff] %v335_v20 }
 0x118 PF: > { %s18_s14 = sadd.s32 1, %s646_s14   ;;  %s777_s9 = smov %s630_s10 }
 0x119   : > { %p15_p0 = scmp.ge.s32.totalorder %s18_s14, 4   ;;  %s778_s10 = smov %s634_s11 }
 0x11a   : > { %s779_s11 = smov %s713_s21  ;;  %s780_s12 = smov %s642_s13 }
 0x11b   : > { %s781_s13 = smov %s783_s16  ;;  %17 = sbr.rel (!%p15_p0) target bundleno = 6 (0x6), region = 89 }
 0x120   :  { %356 = vsyncpa [#allocation4], 1 }
 0x121   :  { %358 = vsyncpa [#allocation4 + $0x1], 1 }
 0x122   :  { %359 = vsyncpa [#allocation6], 1 }
 0x123   :  { %361 = vsyncpa [#allocation6 + $0x1], 1 }

</bundles_post_ra>
